<compile_context>
chip_gen: v7x
topology: tpu7x:2x2x1
jax: 0.10.0
libtpu: 0.0.40
codegen_flags: <defaults>
</compile_context>

<pallas_src>
import functools
import math

import jax
import jax.numpy as jnp
import numpy as np
from jax import lax
from jax.experimental import pallas as pl
from jax.experimental.pallas import tpu as pltpu


# --------------------------------------------------------------------------
# Kernel
# --------------------------------------------------------------------------
def _make_tp_fp_kernel(*, two_class, has_weights, thr_logit, ignore_idx,
                       n_rows, n_cols, tile_n, tile_d):
    """Fused TP/FP reduction over (tile_n, tile_d) blocks of the (N, D) view."""

    def kernel(*refs):
        idx = 0
        labels_ref = refs[idx]; idx += 1
        a_ref = refs[idx]; idx += 1          # class-1 score (or the single logit)
        b_ref = None
        w_ref = None
        if two_class:
            b_ref = refs[idx]; idx += 1      # class-0 score
        if has_weights:
            w_ref = refs[idx]; idx += 1
        out_tp_ref, out_fp_ref = refs[idx], refs[idx + 1]

        i = pl.program_id(0)
        j = pl.program_id(1)

        @pl.when(jnp.logical_and(i == 0, j == 0))
        def _init():
            out_tp_ref[...] = jnp.zeros_like(out_tp_ref)
            out_fp_ref[...] = jnp.zeros_like(out_fp_ref)

        labels = labels_ref[...]                                   # (tn, td) f32

        # Mask out-of-range elements of partial edge blocks.
        row = lax.broadcasted_iota(jnp.int32, (tile_n, tile_d), 0) + i * tile_n
        col = lax.broadcasted_iota(jnp.int32, (tile_n, tile_d), 1) + j * tile_d
        valid = jnp.logical_and(row < n_rows, col < n_cols)

        if two_class:
            pred_true = a_ref[...] > b_ref[...]      # argmax along class dim == 1
        else:
            pred_true = a_ref[...] > thr_logit       # sigmoid(x) > threshold

        if has_weights:
            w = w_ref[...]
        else:
            w = jnp.where(labels != ignore_idx, 1.0, 0.0).astype(jnp.float32)

        trues = labels > 0
        falses = labels == 0

        tp_sel = jnp.where(valid & trues & pred_true, w, 0.0)
        fp_sel = jnp.where(valid & falses & pred_true, w, 0.0)

        tp = jnp.sum(jnp.sum(tp_sel, axis=1, keepdims=True), axis=0, keepdims=True)
        fp = jnp.sum(jnp.sum(fp_sel, axis=1, keepdims=True), axis=0, keepdims=True)

        out_tp_ref[...] += tp
        out_fp_ref[...] += fp

    return kernel


def _tile_sizes(n_rows, n_cols, n_streams):
    """Pick lane-dense block sizes targeting ~2 MiB of input per grid step."""
    tile_n = n_rows if n_rows <= 512 else 512          # 512 is a multiple of 8
    target_bytes = 2 * 1024 * 1024
    bytes_per_col = max(1, tile_n * 4 * n_streams)
    if n_cols * bytes_per_col <= target_bytes:
        tile_d = n_cols                                # one full-width block
    else:
        tile_d = max(128, (target_bytes // bytes_per_col) // 128 * 128)
    return tile_n, tile_d


def _tp_fp_pallas(labels2, a2, b2, w2, *, two_class, has_weights, thr_logit,
                  ignore_idx):
    n_rows, n_cols = labels2.shape
    n_streams = 1 + (2 if two_class else 1) + (1 if has_weights else 0)
    tile_n, tile_d = _tile_sizes(n_rows, n_cols, n_streams)
    grid = (pl.cdiv(n_rows, tile_n), pl.cdiv(n_cols, tile_d))

    tiled_spec = pl.BlockSpec((tile_n, tile_d), lambda i, j: (i, j))
    in_specs = [tiled_spec, tiled_spec]
    inputs = [labels2, a2]
    if two_class:
        in_specs.append(tiled_spec)
        inputs.append(b2)
    if has_weights:
        in_specs.append(tiled_spec)
        inputs.append(w2)

    out_specs = [pl.BlockSpec((1, 1), lambda i, j: (0, 0)),
                 pl.BlockSpec((1, 1), lambda i, j: (0, 0))]
    out_shape = (jax.ShapeDtypeStruct((1, 1), jnp.float32),
                 jax.ShapeDtypeStruct((1, 1), jnp.float32))

    kernel = _make_tp_fp_kernel(two_class=two_class, has_weights=has_weights,
                                thr_logit=thr_logit, ignore_idx=ignore_idx,
                                n_rows=n_rows, n_cols=n_cols,
                                tile_n=tile_n, tile_d=tile_d)

    bytes_accessed = sum(int(x.size) * 4 for x in inputs) + 8
    cost = pl.CostEstimate(flops=8 * n_rows * n_cols, transcendentals=0,
                           bytes_accessed=bytes_accessed)

    tp, fp = pl.pallas_call(
        kernel,
        out_shape=out_shape,
        grid_spec=pltpu.PrefetchScalarGridSpec(
            num_scalar_prefetch=0,
            grid=grid,
            in_specs=in_specs,
            out_specs=out_specs,
        ),
        compiler_params=pltpu.CompilerParams(
            dimension_semantics=("arbitrary", "arbitrary")),
        cost_estimate=cost,
    )(*inputs)
    return tp[0, 0], fp[0, 0]


# --------------------------------------------------------------------------
# Wrapper (prep is jitted so the class-slice / reshape ops fuse around the call)
# --------------------------------------------------------------------------
@functools.partial(jax.jit,
                   static_argnames=("dim", "ignore_idx", "threshold", "has_weights"))
def _precision_tp_fp(labels, preds, weights, *, dim, ignore_idx, threshold,
                     has_weights):
    labels = jnp.asarray(labels)
    preds = jnp.asarray(preds)
    n = labels.shape[0]
    d = int(np.prod(labels.shape[1:])) if labels.ndim > 1 else 1
    labels2 = labels.reshape(n, d).astype(jnp.float32)

    c = preds.shape[dim]
    if c == 1:
        # sigmoid(x) > t  <=>  x > log(t / (1 - t)); threshold folded into kernel.
        a2 = jnp.squeeze(preds, axis=dim).reshape(n, d).astype(jnp.float32)
        b2 = None
        two_class = False
        t = min(max(float(threshold), 1e-7), 1.0 - 1e-7)
        thr_logit = math.log(t / (1.0 - t))
    else:
        assert c == 2, "precision only support 2 class"
        # TODO(synk): the class slice is done here in XLA; fusing it into the
        # kernel would need a 3-D block and a mid-axis squeeze inside the kernel.
        a2 = lax.index_in_dim(preds, 1, axis=dim, keepdims=False) \
                .reshape(n, d).astype(jnp.float32)
        b2 = lax.index_in_dim(preds, 0, axis=dim, keepdims=False) \
                .reshape(n, d).astype(jnp.float32)
        two_class = True
        thr_logit = 0.0

    w2 = None
    if has_weights:
        w2 = jnp.asarray(weights).reshape(n, d).astype(jnp.float32)

    if n == 0 or d == 0:
        z = jnp.zeros((), jnp.float32)
        return z, z

    return _tp_fp_pallas(labels2, a2, b2, w2, two_class=two_class,
                         has_weights=has_weights, thr_logit=thr_logit,
                         ignore_idx=float(ignore_idx))


class Precision:
    """JAX/Pallas port of the PyTorch `Precision` metric module."""

    def __init__(self, dim=1, ignore_idx=-1, threshold=0.5):
        self.total = jnp.zeros((), jnp.float32)
        self.count = jnp.zeros((), jnp.float32)
        self._ignore_idx = ignore_idx
        self._dim = dim
        self._threshold = threshold

    def forward(self, labels, preds, weights=None):
        tp, fp = _precision_tp_fp(labels, preds, weights,
                                  dim=self._dim,
                                  ignore_idx=self._ignore_idx,
                                  threshold=self._threshold,
                                  has_weights=weights is not None)
        batch_count = tp + fp
        # Original: `if count > 0: count += ...; total += ...`.  TP, FP >= 0, so
        # when count == 0 both increments are zero — unconditional add is identical.
        self.count = self.count + batch_count
        self.total = self.total + tp
        return self.value

    __call__ = forward

    @property
    def value(self):
        return self.total / self.count

    def clear(self):
        self.total = jnp.zeros((), jnp.float32)
        self.count = jnp.zeros((), jnp.float32)


# --------------------------------------------------------------------------
# Self-test
# --------------------------------------------------------------------------
def _ref_tp_fp(labels, preds, weights=None, dim=1, ignore_idx=-1, threshold=0.5):
    """Pure-JAX reference of the torch forward (TP / FP only)."""
    if preds.shape[dim] == 1:
        pred_labels = jnp.squeeze(
            (jax.nn.sigmoid(preds) > threshold).astype(jnp.int32), axis=dim)
    else:
        pred_labels = jnp.argmax(preds, axis=dim)
    n = labels.shape[0]
    lab = labels.reshape(n, -1)
    pred = pred_labels.reshape(n, -1)
    if weights is None:
        w = (lab != ignore_idx).astype(jnp.float32)
    else:
        w = weights.reshape(n, -1).astype(jnp.float32)
    tp = jnp.sum(w * ((lab > 0) & (pred > 0)).astype(jnp.float32))
    fp = jnp.sum(w * ((lab == 0) & (pred > 0)).astype(jnp.float32))
    return tp, fp


if __name__ == "__main__":
    key = jax.random.PRNGKey(0)
    k1, k2, k3, k4 = jax.random.split(key, 4)

    # --- two-class path (dim=1), weights=None, some ignored labels (-1) ---
    N, H, W = 2, 16, 16
    labels = jax.random.randint(k1, (N, H, W), -1, 2)              # {-1, 0, 1}
    preds = jax.random.normal(k2, (N, 2, H, W), dtype=jnp.float32)

    metric = Precision(dim=1, ignore_idx=-1, threshold=0.5)
    val = jax.block_until_ready(metric(labels, preds))

    tp_r, fp_r = _ref_tp_fp(labels, preds)
    ref_val = tp_r / (tp_r + fp_r)
    assert jnp.allclose(val, ref_val, atol=1e-5, rtol=1e-5), (val, ref_val)

    # --- second batch: running-buffer accumulation ---
    labels_b = jax.random.randint(k3, (N, H, W), -1, 2)
    preds_b = jax.random.normal(k4, (N, 2, H, W), dtype=jnp.float32)
    val2 = jax.block_until_ready(metric(labels_b, preds_b))
    tp_r2, fp_r2 = _ref_tp_fp(labels_b, preds_b)
    ref_val2 = (tp_r + tp_r2) / (tp_r + fp_r + tp_r2 + fp_r2)
    assert jnp.allclose(val2, ref_val2, atol=1e-5, rtol=1e-5), (val2, ref_val2)

    # --- binary (single-logit) path with explicit weights ---
    k5, k6, k7 = jax.random.split(k4, 3)
    labels_s = jax.random.randint(k5, (N, H, W), 0, 2)
    preds_s = jax.random.normal(k6, (N, 1, H, W), dtype=jnp.float32)
    weights_s = jax.random.uniform(k7, (N, H, W), dtype=jnp.float32)
    metric2 = Precision(dim=1, ignore_idx=-1, threshold=0.5)
    val3 = jax.block_until_ready(metric2(labels_s, preds_s, weights_s))
    tp_r3, fp_r3 = _ref_tp_fp(labels_s, preds_s, weights_s)
    ref_val3 = tp_r3 / (tp_r3 + fp_r3)
    assert jnp.allclose(val3, ref_val3, atol=1e-5, rtol=1e-5), (val3, ref_val3)

    print("KERNEL_OK")
</pallas_src>

<mosaic_0001>
module attributes {stable_mosaic.version = 11 : i64} {
  func.func @kernel(%arg0: i32, %arg1: i32, %arg2: memref<2x256xf32, #tpu.memory_space<vmem>>, %arg3: memref<2x256xf32, #tpu.memory_space<vmem>>, %arg4: memref<2x256xf32, #tpu.memory_space<vmem>>, %arg5: memref<1x1xf32, #tpu.memory_space<vmem>>, %arg6: memref<1x1xf32, #tpu.memory_space<vmem>>) attributes {dimension_semantics = [#tpu.dimension_semantics<arbitrary>, #tpu.dimension_semantics<arbitrary>], iteration_bounds = array<i64: 1, 1>, scalar_prefetch = 0 : i64, scratch_operands = 0 : i64, tpu.core_type = #tpu.core_type<tc>, window_params = [{transform_indices = @transform_0, window_bounds = array<i64: 2, 256>}, {transform_indices = @transform_1, window_bounds = array<i64: 2, 256>}, {transform_indices = @transform_2, window_bounds = array<i64: 2, 256>}, {pipeline_mode = #tpu.pipeline_mode<synchronous>, transform_indices = @transform_3, window_bounds = array<i64: 1, 1>}, {pipeline_mode = #tpu.pipeline_mode<synchronous>, transform_indices = @transform_4, window_bounds = array<i64: 1, 1>}]} {
    %c0_i32 = arith.constant 0 : i32
    %0 = arith.cmpi eq, %arg0, %c0_i32 : i32
    %c0_i32_0 = arith.constant 0 : i32
    %1 = arith.cmpi eq, %arg1, %c0_i32_0 : i32
    %2 = arith.andi %0, %1 : i1
    %3 = arith.extui %2 : i1 to i32
    %c0_i32_1 = arith.constant 0 : i32
    %4 = arith.cmpi ne, %3, %c0_i32_1 : i32
    scf.if %4 {
      %cst_27 = arith.constant 0.000000e+00 : f32
      %53 = vector.broadcast %cst_27 : f32 to vector<1x1xf32>
      %c0_28 = arith.constant 0 : index
      %c0_29 = arith.constant 0 : index
      %54 = vector.load %arg5[%c0_28, %c0_29] : memref<1x1xf32, #tpu.memory_space<vmem>>, vector<1x1xf32>
      tpu.vector_store %arg5[%c0_28, %c0_29], %53 {strides = array<i32>} : memref<1x1xf32, #tpu.memory_space<vmem>>, vector<1x1xf32>,
      %cst_30 = arith.constant 0.000000e+00 : f32
      %55 = vector.broadcast %cst_30 : f32 to vector<1x1xf32>
      %c0_31 = arith.constant 0 : index
      %c0_32 = arith.constant 0 : index
      %56 = vector.load %arg6[%c0_31, %c0_32] : memref<1x1xf32, #tpu.memory_space<vmem>>, vector<1x1xf32>
      tpu.vector_store %arg6[%c0_31, %c0_32], %55 {strides = array<i32>} : memref<1x1xf32, #tpu.memory_space<vmem>>, vector<1x1xf32>,
    } else {
    }
    %c0 = arith.constant 0 : index
    %c0_2 = arith.constant 0 : index
    %5 = vector.load %arg2[%c0, %c0_2] : memref<2x256xf32, #tpu.memory_space<vmem>>, vector<2x256xf32>
    %6 = tpu.iota {dimensions = array<i32: 0>} : vector<2x256xi32>
    %c2_i32 = arith.constant 2 : i32
    %7 = arith.muli %arg0, %c2_i32 : i32
    %8 = vector.broadcast %7 : i32 to vector<2x256xi32>
    %9 = arith.addi %6, %8 : vector<2x256xi32>
    %10 = tpu.iota {dimensions = array<i32: 1>} : vector<2x256xi32>
    %c256_i32 = arith.constant 256 : i32
    %11 = arith.muli %arg1, %c256_i32 : i32
    %12 = vector.broadcast %11 : i32 to vector<2x256xi32>
    %13 = arith.addi %10, %12 : vector<2x256xi32>
    %c2_i32_3 = arith.constant 2 : i32
    %14 = vector.broadcast %c2_i32_3 : i32 to vector<2x256xi32>
    %15 = arith.cmpi slt, %9, %14 : vector<2x256xi32>
    %c256_i32_4 = arith.constant 256 : i32
    %16 = vector.broadcast %c256_i32_4 : i32 to vector<2x256xi32>
    %17 = arith.cmpi slt, %13, %16 : vector<2x256xi32>
    %18 = arith.andi %15, %17 : vector<2x256xi1>
    %c0_5 = arith.constant 0 : index
    %c0_6 = arith.constant 0 : index
    %19 = vector.load %arg3[%c0_5, %c0_6] : memref<2x256xf32, #tpu.memory_space<vmem>>, vector<2x256xf32>
    %c0_7 = arith.constant 0 : index
    %c0_8 = arith.constant 0 : index
    %20 = vector.load %arg4[%c0_7, %c0_8] : memref<2x256xf32, #tpu.memory_space<vmem>>, vector<2x256xf32>
    %21 = arith.cmpf ogt, %19, %20 : vector<2x256xf32>
    %cst = arith.constant -1.000000e+00 : f32
    %22 = vector.broadcast %cst : f32 to vector<2x256xf32>
    %23 = arith.cmpf one, %5, %22 : vector<2x256xf32>
    %cst_9 = arith.constant 1.000000e+00 : f32
    %cst_10 = arith.constant 0.000000e+00 : f32
    %24 = vector.broadcast %cst_9 : f32 to vector<2x256xf32>
    %25 = vector.broadcast %cst_10 : f32 to vector<2x256xf32>
    %26 = arith.select %23, %24, %25 : vector<2x256xi1>, vector<2x256xf32>
    %cst_11 = arith.constant 0.000000e+00 : f32
    %27 = vector.broadcast %cst_11 : f32 to vector<2x256xf32>
    %28 = arith.cmpf ogt, %5, %27 : vector<2x256xf32>
    %cst_12 = arith.constant 0.000000e+00 : f32
    %29 = vector.broadcast %cst_12 : f32 to vector<2x256xf32>
    %30 = arith.cmpf oeq, %5, %29 : vector<2x256xf32>
    %31 = arith.andi %18, %28 : vector<2x256xi1>
    %32 = arith.andi %31, %21 : vector<2x256xi1>
    %cst_13 = arith.constant 0.000000e+00 : f32
    %33 = vector.broadcast %cst_13 : f32 to vector<2x256xf32>
    %34 = arith.select %32, %26, %33 : vector<2x256xi1>, vector<2x256xf32>
    %35 = arith.andi %18, %30 : vector<2x256xi1>
    %36 = arith.andi %35, %21 : vector<2x256xi1>
    %cst_14 = arith.constant 0.000000e+00 : f32
    %37 = vector.broadcast %cst_14 : f32 to vector<2x256xf32>
    %38 = arith.select %36, %26, %37 : vector<2x256xi1>, vector<2x256xf32>
    %cst_15 = arith.constant dense<0.000000e+00> : vector<2xf32>
    %39 = vector.multi_reduction <add>, %34, %cst_15 [1] : vector<2x256xf32> to vector<2xf32>
    %40 = vector.shape_cast %39 : vector<2xf32> to vector<2x1xf32>
    %cst_16 = arith.constant dense<0.000000e+00> : vector<1xf32>
    %41 = vector.multi_reduction <add>, %40, %cst_16 [0] : vector<2x1xf32> to vector<1xf32>
    %42 = vector.shape_cast %41 : vector<1xf32> to vector<1x1xf32>
    %cst_17 = arith.constant dense<0.000000e+00> : vector<2xf32>
    %43 = vector.multi_reduction <add>, %38, %cst_17 [1] : vector<2x256xf32> to vector<2xf32>
    %44 = vector.shape_cast %43 : vector<2xf32> to vector<2x1xf32>
    %cst_18 = arith.constant dense<0.000000e+00> : vector<1xf32>
    %45 = vector.multi_reduction <add>, %44, %cst_18 [0] : vector<2x1xf32> to vector<1xf32>
    %46 = vector.shape_cast %45 : vector<1xf32> to vector<1x1xf32>
    %c0_19 = arith.constant 0 : index
    %c0_20 = arith.constant 0 : index
    %47 = vector.load %arg5[%c0_19, %c0_20] : memref<1x1xf32, #tpu.memory_space<vmem>>, vector<1x1xf32>
    %48 = arith.addf %47, %42 : vector<1x1xf32>
    %c0_21 = arith.constant 0 : index
    %c0_22 = arith.constant 0 : index
    %49 = vector.load %arg5[%c0_21, %c0_22] : memref<1x1xf32, #tpu.memory_space<vmem>>, vector<1x1xf32>
    tpu.vector_store %arg5[%c0_21, %c0_22], %48 {strides = array<i32>} : memref<1x1xf32, #tpu.memory_space<vmem>>, vector<1x1xf32>,
    %c0_23 = arith.constant 0 : index
    %c0_24 = arith.constant 0 : index
    %50 = vector.load %arg6[%c0_23, %c0_24] : memref<1x1xf32, #tpu.memory_space<vmem>>, vector<1x1xf32>
    %51 = arith.addf %50, %46 : vector<1x1xf32>
    %c0_25 = arith.constant 0 : index
    %c0_26 = arith.constant 0 : index
    %52 = vector.load %arg6[%c0_25, %c0_26] : memref<1x1xf32, #tpu.memory_space<vmem>>, vector<1x1xf32>
    tpu.vector_store %arg6[%c0_25, %c0_26], %51 {strides = array<i32>} : memref<1x1xf32, #tpu.memory_space<vmem>>, vector<1x1xf32>,
    return
  }
  func.func @transform_0(%arg0: i32, %arg1: i32) -> (i32, i32) {
    %c0_i32 = arith.constant 0 : i32
    return %arg0, %arg1 : i32, i32
  }
  func.func @transform_1(%arg0: i32, %arg1: i32) -> (i32, i32) {
    %c0_i32 = arith.constant 0 : i32
    return %arg0, %arg1 : i32, i32
  }
  func.func @transform_2(%arg0: i32, %arg1: i32) -> (i32, i32) {
    %c0_i32 = arith.constant 0 : i32
    return %arg0, %arg1 : i32, i32
  }
  func.func @transform_3(%arg0: i32, %arg1: i32) -> (i32, i32) {
    %c0_i32 = arith.constant 0 : i32
    %c0_i32_0 = arith.constant 0 : i32
    %c0_i32_1 = arith.constant 0 : i32
    return %c0_i32, %c0_i32_0 : i32, i32
  }
  func.func @transform_4(%arg0: i32, %arg1: i32) -> (i32, i32) {
    %c0_i32 = arith.constant 0 : i32
    %c0_i32_0 = arith.constant 0 : i32
    %c0_i32_1 = arith.constant 0 : i32
    return %c0_i32, %c0_i32_0 : i32, i32
  }
}

</mosaic_0001>

<bundles_post_ra>
// kernel: squeeze.4
= control target key start
LH: loop header
LB: loop body
LE: loop exit
PB: predicated region body
PF: predicated region fallthrough
CT: control target
= control target key end

     0   :  { %s8_s6 = smov 3  ;;  %s11_s7 = smov 12  ;;  %vm13_vm0 = vcmask 1043458   ;;  %vm3_vm1 = vcmask 130048   ;;  %vm17_vm2 = vcmask 1048448   ;;  %vm31_vm3 = vcmask 917248   ;;  %s213_s0 = inlined_call_operand.vmem [shape: f32[2,1,16,16], index: 0, kind: input, shape index: {}]   ;;  %s214_s1 = inlined_call_operand.vmem [shape: f32[2,256], index: 1, kind: output, shape index: {}]  }
   0x1   :  { %v116_v0 = vld [vmem:[%s213_s0 + $0x7] ss:$16 sm:%s8_s6]   ;;  %v117_v1 = vld [vmem:[%s213_s0 - $0x11] ss:$16 sm:%s11_s7]   ;;  %s36_s12 = smov 3  ;;  %s39_s15 = smov 12 }
   0x2   :  { %v14_v2 = vsel %vm13_vm0, %v117_v1, %v116_v0  ;;  %v120_v3 = vld [vmem:[%s213_s0 + $0x5] ss:$16 sm:%s36_s12]   ;;  %s138_s16 = smov 112   ;;  %v121_v4 = vld [vmem:[%s213_s0 - $0x13] ss:$16 sm:%s39_s15]   ;;  %s22_s19 = smov 3 }
   0x3   :  { %15 = vrot.lane.b32.xlu0 %v14_v2, %s138_s16  ;;  %s25_s20 = smov 12  ;;  %v42_v5 = vsel %vm13_vm0, %v121_v4, %v120_v3  ;;  %v118_v6 = vld [vmem:[%s213_s0 + $0x6] ss:$16 sm:%s22_s19]   ;;  %s50_s25 = smov 3  ;;  %vm45_vm4 = vcmask 786048   ;;  %vm59_vm5 = vcmask 654848  }
   0x4   :  { %v119_v7 = vld [vmem:[%s213_s0 - $0x12] ss:$16 sm:%s25_s20]   ;;  %s139_s26 = smov 80   ;;  %v122_v9 = vld [vmem:[%s213_s0 + $0x4] ss:$16 sm:%s50_s25]   ;;  %s53_s29 = smov 12 }
   0x5   :  { %43 = vrot.lane.b32.xlu1 %v42_v5, %s139_s26  ;;  %v28_v8 = vsel %vm13_vm0, %v119_v7, %v118_v6  ;;  %v123_v10 = vld [vmem:[%s213_s0 - $0x14] ss:$16 sm:%s53_s29]   ;;  %s64_s3 = smov 3  ;;  %s67_s4 = smov 12  ;;  %vm73_vm6 = vcmask 523648   ;;  %vm87_vm7 = vcmask 392448  }
   0x6   :  { %s140_s5 = smov 96   ;;  %v56_v11 = vsel %vm13_vm0, %v123_v10, %v122_v9  ;;  %v124_v12 = vld [vmem:[%s213_s0 + $0x3] ss:$16 sm:%s64_s3]   ;;  %s78_s8 = smov 3  ;;  %v125_v13 = vld [vmem:[%s213_s0 - $0x15] ss:$16 sm:%s67_s4]  }
   0x7   :  { %29 = vrot.lane.b32.xlu0 %v28_v8, %s140_s5  ;;  %v126_v14 = vld [vmem:[%s213_s0 + $0x2] ss:$16 sm:%s78_s8]   ;;  %s81_s13 = smov 12  ;;  %s141_s14 = smov 64   ;;  %v70_v15 = vsel %vm13_vm0, %v125_v13, %v124_v12  ;;  %vm101_vm8 = vcmask 261248  }
   0x8   :  { %v127_v16 = vld [vmem:[%s213_s0 - $0x16] ss:$16 sm:%s81_s13]   ;;  %s92_s17 = smov 3  ;;  %s95_s18 = smov 12 }
   0x9   :  { %57 = vrot.lane.b32.xlu1 %v56_v11, %s141_s14  ;;  %v84_v17 = vsel %vm13_vm0, %v127_v16, %v126_v14  ;;  %v128_v18 = vld [vmem:[%s213_s0 + $0x1] ss:$16 sm:%s92_s17]   ;;  %s142_s23 = smov 48   ;;  %v2_v20 = vld [vmem:[%s213_s0] ss:$8 sm:$0xf]  }
   0xa   :  { %v129_v19 = vld [vmem:[%s213_s0 - $0x17] ss:$16 sm:%s95_s18]   ;;  %4 = vst.msk [vmem:[#allocation0] ss:$8 sm:$0x3] %vm3_vm1, %v2_v20   ;;  %s143_s0 = smov 32  }
   0xb   :  { %71 = vrot.lane.b32.xlu0 %v70_v15, %s142_s23  ;;  %v98_v21 = vsel %vm13_vm0, %v129_v19, %v128_v18  ;;  %6 = vst.msk [vmem:[#allocation0 - $0xf] ss:$8 sm:$0xc] %vm3_vm1, %v2_v20   ;;  %s144_s26 = smov 16  }
   0xd   :  { %85 = vrot.lane.b32.xlu1 %v84_v17, %s143_s0 }
   0xf   :  { %99 = vrot.lane.b32.xlu0 %v98_v21, %s144_s26 }
  0x75   :  { %v16_v22 = vpop.permute.xlu0 %15  }
  0x76   :  { %18 = vst.msk [vmem:[#allocation0] sm:$0x3] %vm17_vm2, %v16_v22   ;;  %20 = vst.msk [vmem:[#allocation0 + $0x6] sm:$0xc] %vm17_vm2, %v16_v22  }
  0x77   :  { %v44_v23 = vpop.permute.xlu1 %43  }
  0x79   :  { %v30_v24 = vpop.permute.xlu0 %29  }
  0x7a   :  { %32 = vst.msk [vmem:[#allocation0] sm:$0x3] %vm31_vm3, %v30_v24   ;;  %34 = vst.msk [vmem:[#allocation0 + $0x6] sm:$0xc] %vm31_vm3, %v30_v24  }
  0x7b   :  { %46 = vst.msk [vmem:[#allocation0] sm:$0x3] %vm45_vm4, %v44_v23   ;;  %48 = vst.msk [vmem:[#allocation0 + $0x6] sm:$0xc] %vm45_vm4, %v44_v23   ;;  %v58_v25 = vpop.permute.xlu1 %57  }
  0x7c   :  { %60 = vst.msk [vmem:[#allocation0] sm:$0x3] %vm59_vm5, %v58_v25   ;;  %62 = vst.msk [vmem:[#allocation0 + $0x6] sm:$0xc] %vm59_vm5, %v58_v25  }
  0x7d   :  { %v72_v26 = vpop.permute.xlu0 %71  }
  0x7e   :  { %74 = vst.msk [vmem:[#allocation0] sm:$0x3] %vm73_vm6, %v72_v26   ;;  %76 = vst.msk [vmem:[#allocation0 + $0x6] sm:$0xc] %vm73_vm6, %v72_v26  }
  0x7f   :  { %v86_v27 = vpop.permute.xlu1 %85  }
  0x80   :  { %88 = vst.msk [vmem:[#allocation0] sm:$0x3] %vm87_vm7, %v86_v27   ;;  %90 = vst.msk [vmem:[#allocation0 + $0x6] sm:$0xc] %vm87_vm7, %v86_v27  }
  0x81   :  { %v100_v28 = vpop.permute.xlu0 %99  }
  0x82   :  { %102 = vst.msk [vmem:[#allocation0] sm:$0x3] %vm101_vm8, %v100_v28   ;;  %104 = vst.msk [vmem:[#allocation0 + $0x6] sm:$0xc] %vm101_vm8, %v100_v28  }
  0x89   :  { %v108_v29 = vld [vmem:[#allocation0] sm:$0x3]  ;;  %v112_v30 = vld [vmem:[#allocation0 + $0x8] sm:$0x3] }
  0x8a   :  { %110 = vst [vmem:[%s214_s1] sm:$0x3] %v108_v29  ;;  %130 = vst [vmem:[%s214_s1 + $0x2] sm:$0x3] %v112_v30 }

// kernel: _precision_tp_fp.1
= control target key start
LH: loop header
LB: loop body
LE: loop exit
PB: predicated region body
PF: predicated region fallthrough
CT: control target
= control target key end

     0   :  { %10 = vsyncpa [#allocation3], 0  ;;  %v28_v1 = vlaneseq  ;;  %s308_s0 = inlined_call_operand.vmem [shape: f32[2,256], index: 0, kind: input, shape index: {}]   ;;  %s309_s1 = inlined_call_operand.vmem [shape: f32[2,256], index: 1, kind: input, shape index: {}]   ;;  %s310_s2 = inlined_call_operand.vmem [shape: f32[2,256], index: 2, kind: input, shape index: {}]   ;;  %s311_s3 = inlined_call_operand.hbm [shape: f32[1,1], index: 3, kind: output, shape index: {0}]   ;;  %s312_s4 = inlined_call_operand.hbm [shape: f32[1,1], index: 4, kind: output, shape index: {1}]  }
   0x1   :  { %v27_v0 = vld [vmem:[%s308_s0] sm:$0xf] }
   0x2   :  { %v45_v2 = vld [vmem:[%s309_s1] sm:$0xf]  ;;  %vm48_vm0 = vcmp.ne.f32.partialorder %v27_v0, -1.0  ;;  %vm50_vm1 = vcmp.gt.f32.partialorder %v27_v0, 0.0 }
   0x3   :  { %v46_v3 = vld [vmem:[%s310_s2] sm:$0xf] }
   0x4   :  { %11 = vsyncpa [#allocation5], 0  ;;  %v29_v4 = vshrl.u32 %v28_v1, 7  ;;  %vm47_vm2 = vcmp.gt.f32.partialorder %v45_v2, %v46_v3  ;;  %v221_v5 = vmov 1983009808   ;;  %vm51_vm3 = vcmp.eq.f32.partialorder %v27_v0, 0.0 }
   0x5   :  { %v54_v6 = vunpack.c.l.s4 %v221_v5  ;;  %v222_v8 = vmov 0.0   ;;  %v223_v10 = vmov 0   ;;  %vm108_vm8 = vcmask 1041408   ;;  %s224_s0 = smov [#allocation2]   ;;  %s225_s2 = smov [#allocation4]  }
   0x6   :  { %v49_v9 = vsel %vm48_vm0, 1.0, %v222_v8  ;;  %v52_v11 = vsel %vm50_vm1, 1, %v223_v10  ;;  %v65_v12 = vsel %vm47_vm2, 1, %v223_v10  ;;  %v91_v13 = vsel %vm51_vm3, 1, %v223_v10  ;;  %s146_s1 = sshll.u32 %s224_s0, 4  ;;  %s156_s21 = sshll.u32 %s225_s2, 4  ;;  %s147_s1 = int_to_ptr.vmem [resolvable:$true] %s146_s1  ;;  %s157_s21 = int_to_ptr.vmem [resolvable:$true] %s156_s21 }
   0x7   :  { %v55_v7 = vunpack.c.0.s8 %v54_v6  ;;  %vm40_vm4 = vcmp.lt.s32.totalorder %v29_v4, 2  ;;  %s173_s22 = scalar_lea.vmem %s147_s1, 16  ;;  %s177_s23 = scalar_lea.vmem %s147_s1, 32 }
   0x8   :  { %p174_p0 = scmp.ne.s32.totalorder %s147_s1, %s173_s22  ;;  %p178_p1 = scmp.lt.s32.totalorder %s147_s1, %s147_s1 }
   0x9   :  { %v58_v14 = vsub.s32 %v55_v7, %v29_v4  ;;  %p179_p2 = scmp.lt.s32.totalorder %s177_s23, %s173_s22 }
   0xb   :  { %v59_v15 = vrot.slane %v52_v11, %v58_v14  ;;  %v72_v16 = vrot.slane %v65_v12, %v58_v14  ;;  %v85_v17 = vrot.slane %v49_v9, %v58_v14  ;;  %v98_v18 = vrot.slane %v91_v13, %v58_v14  ;;  %p180_p3 = por %p179_p2, %p178_p1 }
   0xd   :  { %v60_v19 = vcombine.high %v59_v15, %v59_v15  ;;  %vm61_vm5 = vcmp.ne.s32.totalorder %v59_v15, 0  ;;  %v73_v20 = vcombine.high %v72_v16, %v72_v16  ;;  %vm74_vm6 = vcmp.ne.s32.totalorder %v72_v16, 0  ;;  %p181_p4 = pnand %p180_p3, %p174_p0 }
   0xe   :  { %vm63_vm7 = vmand %vm40_vm4, %vm61_vm5  ;;  %v86_v21 = vcombine.high %v85_v17, %v85_v17  ;;  %v99_v22 = vcombine.high %v98_v18, %v98_v18  ;;  %vm100_vm12 = vcmp.ne.s32.totalorder %v98_v18, 0  ;;  %vm24_vm5 = vcmask 0  }
   0xf   :  { %vm62_vm9 = vcmp.ne.s32.totalorder %v60_v19, 0  ;;  %vm261_vm10 = vcmp.ne.s32.totalorder %v73_v20, 0  ;;  %vm76_vm11 = vmand %vm63_vm7, %vm74_vm6  ;;  %25 = vst.msk [vmem:[#allocation2] sm:$0x1] %vm24_vm5, %v222_v8 }
  0x10   :  { %vm64_vm13 = vmand %vm40_vm4, %vm62_vm9  ;;  %v89_v24 = vsel %vm76_vm11, %v85_v17, 0.0  ;;  %vm101_vm14 = vcmp.ne.s32.totalorder %v99_v22, 0  ;;  %26 = vst.msk [vmem:[#allocation4] sm:$0x1] %vm24_vm5, %v222_v8 }
  0x11   :  { %vm77_vm15 = vmand %vm64_vm13, %vm261_vm10  ;;  %v109_v25 = vsel %vm108_vm8, %v89_v24, 0.0 }
  0x12   :  { %v90_v26 = vsel %vm77_vm15, %v86_v21, 0.0  ;;  %vm102_vm0 = vmand %vm40_vm4, %vm100_vm12 }
  0x13   :  { %v110_v27 = vsel %vm108_vm8, %v90_v26, 0.0  ;;  %vm103_vm1 = vmand %vm40_vm4, %vm101_vm14 }
  0x14   :  { %v111_v28 = vadd.f32 %v110_v27, %v109_v25  ;;  %vm104_vm2 = vmand %vm102_vm0, %vm74_vm6 }
  0x15   :  { %vm105_vm3 = vmand %vm103_vm1, %vm261_vm10  ;;  %v106_v29 = vsel %vm104_vm2, %v85_v17, 0.0 }
  0x16   :  { %112 = vadd.xlane.f32.xlu0 %v111_v28  ;;  %v107_v30 = vsel %vm105_vm3, %v86_v21, 0.0  ;;  %v121_v31 = vsel %vm108_vm8, %v106_v29, 0.0  ;;  %v133_v46 = vld [vmem:[#allocation2] sm:$0x1] }
  0x17   :  { %v122_v32 = vsel %vm108_vm8, %v107_v30, 0.0  ;;  %v137_v51 = vld [vmem:[#allocation4] sm:$0x1] }
  0x18   :  { %v123_v33 = vadd.f32 %v122_v32, %v121_v31 }
  0x1a   :  { %124 = vadd.xlane.f32.xlu0 %v123_v33 }
  0xa3   :  { %v113_v34 = vpop.xlane.xlu0 %112 }
  0xa4   :  { %v114_v35 = vsel %vm108_vm8, %v113_v34, 0.0 }
  0xa5   :  { %v115_v36 = vrot.slane %v114_v35, 4 }
  0xa7   :  { %v116_v37 = vadd.f32 %v115_v36, %v114_v35  ;;  %v125_v38 = vpop.xlane.xlu0 %124 }
  0xa8   :  { %v126_v39 = vsel %vm108_vm8, %v125_v38, 0.0 }
  0xa9   :  { %v117_v40 = vrot.slane %v116_v37, 2  ;;  %v127_v41 = vrot.slane %v126_v39, 4 }
  0xab   :  { %v118_v42 = vadd.f32 %v117_v40, %v116_v37  ;;  %v128_v43 = vadd.f32 %v127_v41, %v126_v39 }
  0xad   :  { %v119_v44 = vrot.slane %v118_v42, 1  ;;  %v129_v45 = vrot.slane %v128_v43, 2 }
  0xaf   :  { %v120_v47 = vadd.f32 %v119_v44, %v118_v42  ;;  %v130_v48 = vadd.f32 %v129_v45, %v128_v43 }
  0xb1   :  { %v131_v49 = vrot.slane %v130_v48, 1  ;;  %v134_v50 = vadd.f32 %v133_v46, %v120_v47 }
  0xb3   :  { %v132_v52 = vadd.f32 %v131_v49, %v130_v48  ;;  %136 = vst.msk [vmem:[#allocation2] sm:$0x1] %vm24_vm5, %v134_v50 }
  0xb4   :  { %184 = shalt.err (!%p181_p4)
}
  0xb5   :  { %s185_s26 = scalar_lea.hbm %s311_s3, 16 }
  0xb6   :  { %p186_p5 = scmp.ne.s32.totalorder %s311_s3, %s185_s26  ;;  %p189_p6 = scmp.lt.u32.totalorder %s185_s26, %s311_s3 }
  0xb8   :  { %p191_p7 = pnand %p189_p6, %p186_p5 }
  0xba   :  { %194 = shalt.err (!%p191_p7)
}
  0xbb   :  { %149 = dma.vmem_to_hbm [thread:$0]  %s147_s1, 16, %s311_s3, [#allocation3]   ;;  %v138_v53 = vadd.f32 %v137_v51, %v132_v52 }
  0xbc   :  { %s195_s7 = scalar_lea.vmem %s157_s21, 16  ;;  %s199_s8 = scalar_lea.vmem %s157_s21, 32 }
  0xbd   :  { %139 = vst.msk [vmem:[#allocation4] sm:$0x1] %vm24_vm5, %v138_v53  ;;  %p196_p8 = scmp.ne.s32.totalorder %s157_s21, %s195_s7  ;;  %p200_p9 = scmp.lt.s32.totalorder %s157_s21, %s157_s21 }
  0xbe   :  { %p201_p10 = scmp.lt.s32.totalorder %s199_s8, %s195_s7 }
  0xc0   :  { %p202_p11 = por %p201_p10, %p200_p9 }
  0xc2   :  { %p203_p12 = pnand %p202_p11, %p196_p8 }
  0xc4   :  { %206 = shalt.err (!%p203_p12)
}
  0xc5   :  { %s207_s11 = scalar_lea.hbm %s312_s4, 16 }
  0xc6   :  { %p208_p13 = scmp.ne.s32.totalorder %s312_s4, %s207_s11  ;;  %p211_p0 = scmp.lt.u32.totalorder %s207_s11, %s312_s4 }
  0xc8   :  { %p213_p1 = pnand %p211_p0, %p208_p13 }
  0xca   :  { %216 = shalt.err (!%p213_p1)
}
  0xcb   :  { %159 = dma.vmem_to_hbm [thread:$0]  %s157_s21, 16, %s312_s4, [#allocation5]  }
  0xcc   :  { %217 = dma.done.wait [#allocation3], 16  }
  0xcd   :  { %218 = vsyncadd [#allocation3], 4294967280 }
  0xce   :  { %219 = dma.done.wait [#allocation5], 16  }
  0xcf   :  { %220 = vsyncadd [#allocation5], 4294967280 }
  0xd0   :  { %166 = vsyncpa [#allocation3], 1 }
  0xd1   :  { %167 = vsyncpa [#allocation5], 1 }

</bundles_post_ra>
